<compile_context>
chip_gen: v7x
topology: tpu7x:2x2x1
jax: 0.10.0
libtpu: 0.0.40
codegen_flags: <defaults>
</compile_context>

<pallas_src>
import functools

import jax
import jax.numpy as jnp
from jax import lax
from jax.experimental import pallas as pl
from jax.experimental.pallas import tpu as pltpu


# ---------------------------------------------------------------------------
# small helpers
# ---------------------------------------------------------------------------
def _round_up(x, m):
    return ((x + m - 1) // m) * m


def _excl_cumsum(v):
    return jnp.concatenate([jnp.zeros((1,), v.dtype), jnp.cumsum(v)[:-1]])


def _select_tiles(n_tokens, hidden, ffn):
    """Generation-aware tiles for the grouped FFN.

    Weight streaming gives arithmetic intensity ~= tt FLOPs/byte, so push the
    token tile toward 512 rows whenever the double-buffered blocks fit VMEM:
    v5e/v6e (128 MiB) -> tf=512; v7x (64 MiB) -> tf=256.
    """
    try:
        vmem_bytes = int(pltpu.get_tpu_info().vmem_capacity_bytes)
    except Exception:  # no hardware info available -> assume smallest (v7x)
        vmem_bytes = 64 << 20
    big_vmem = vmem_bytes >= (100 << 20)
    tf_target = 512 if big_vmem else 256

    # --- F chunk: full dim if small, an exact divisor if possible, else pad F.
    if ffn <= tf_target:
        tf, ffn_padded = ffn, ffn
    else:
        tf = 0
        for cand in range(tf_target, 127, -128):
            if ffn % cand == 0:
                tf = cand
                break
        if tf:
            ffn_padded = ffn
        else:
            tf = tf_target
            ffn_padded = _round_up(ffn, tf_target)   # zero-pad weights in wrapper

    # --- token tile: as large as the VMEM budget allows (multiple of 16 rows).
    tt = min(512, _round_up(max(n_tokens, 1), 16))

    def footprint(tt_, tf_):
        return (2 * tt_ * hidden * 2          # x blocks (bf16, double-buffered)
                + 2 * 3 * hidden * tf_ * 2    # W1/W2/W3 blocks (bf16, double-buffered)
                + 2 * tt_ * hidden * 2        # bf16 output blocks (double-buffered)
                + tt_ * hidden * 4            # f32 accumulator scratch
                + 2 * tt_ * 4)                # per-row combine weights

    budget = int(vmem_bytes * 0.70)           # leave headroom for Mosaic scratch
    while tt > 16 and footprint(tt, tf) > budget:
        tt = max(16, _round_up(tt // 2, 16))

    vmem_limit = min(int(vmem_bytes * 0.75), footprint(tt, tf) + (16 << 20))
    return tt, tf, ffn_padded, int(vmem_limit)


# ---------------------------------------------------------------------------
# Gate kernel: logits = x @ Wg ; argmax index + top-1 softmax prob +
# per-tile gate sums (so the wrapper never round-trips a (T,E) gates array).
# ---------------------------------------------------------------------------
def _gate_kernel(x_ref, wg_ref, idx_ref, top1_ref, gsum_ref, *, n_tokens, tile_rows):
    logits = jnp.dot(x_ref[...], wg_ref[...], preferred_element_type=jnp.float32)
    m = jnp.max(logits, axis=-1, keepdims=True)
    p = jnp.exp(logits - m)
    s = jnp.sum(p, axis=-1, keepdims=True)
    inv = 1.0 / s                                   # exact; parity over approx
    n_exp = logits.shape[-1]
    # first-max argmax; max and comparison come from the same in-kernel values.
    e_iota = lax.broadcasted_iota(jnp.int32, logits.shape, 1)
    idx_ref[...] = jnp.min(jnp.where(logits == m, e_iota, n_exp),
                           axis=-1, keepdims=True)
    top1_ref[...] = inv                             # gates[argmax] = exp(0) * inv
    # per-tile sum of gates (mask rows past n_tokens in a partial last tile)
    row = (lax.broadcasted_iota(jnp.int32, (tile_rows, 1), 0)
           + pl.program_id(0) * tile_rows)
    gates = jnp.where(row < n_tokens, p * inv, 0.0)
    gsum_ref[...] = jnp.sum(gates, axis=0, keepdims=True)[None]


def gate_router(x, wg):
    tokens, hidden = x.shape
    n_exp = wg.shape[1]
    tg = tokens if tokens <= 256 else 256
    num_tiles = pl.cdiv(tokens, tg)
    kernel = functools.partial(_gate_kernel, n_tokens=tokens, tile_rows=tg)
    return pl.pallas_call(
        kernel,
        out_shape=(jax.ShapeDtypeStruct((tokens, 1), jnp.int32),
                   jax.ShapeDtypeStruct((tokens, 1), jnp.float32),
                   jax.ShapeDtypeStruct((num_tiles, 1, n_exp), jnp.float32)),
        grid_spec=pltpu.PrefetchScalarGridSpec(
            num_scalar_prefetch=0,
            grid=(num_tiles,),
            in_specs=[pl.BlockSpec((tg, hidden), lambda i: (i, 0)),
                      pl.BlockSpec((hidden, n_exp), lambda i: (0, 0))],
            out_specs=[pl.BlockSpec((tg, 1), lambda i: (i, 0)),
                       pl.BlockSpec((tg, 1), lambda i: (i, 0)),
                       pl.BlockSpec((1, 1, n_exp), lambda i: (i, 0, 0))]),
        compiler_params=pltpu.CompilerParams(dimension_semantics=("parallel",)),
    )(x, wg)


# ---------------------------------------------------------------------------
# Grouped expert FFN kernel.
# grid = (token_tiles, F_chunks).  Tile i holds tokens of exactly one expert
# (tile_expert[i], via scalar prefetch); the F axis is a reduction into a
# VMEM f32 accumulator.  y = (SiLU(x@W1) * (x@W2)) @ W3 ; out = (y * row_w) bf16.
# Fully-padded tiles (tile_valid[i]==0) skip all three matmuls.
# ---------------------------------------------------------------------------
def _grouped_ffn_kernel(te_ref, tv_ref, x_ref, w_ref, w1_ref, w2_ref, w3_ref,
                        out_ref, acc_ref):
    i = pl.program_id(0)
    j = pl.program_id(1)

    @pl.when(j == 0)
    def _():
        acc_ref[...] = jnp.zeros_like(acc_ref)

    @pl.when(tv_ref[i] > 0)
    def _():
        x = x_ref[...]                                                    # (tt,H) bf16
        h1 = jnp.dot(x, w1_ref[...], preferred_element_type=jnp.float32)  # (tt,tf) f32
        h2 = jnp.dot(x, w2_ref[...], preferred_element_type=jnp.float32)
        h = (h1 * jax.nn.sigmoid(h1)) * h2                                # SwiGLU in f32
        acc_ref[...] += jnp.dot(h.astype(jnp.bfloat16), w3_ref[...],
                                preferred_element_type=jnp.float32)       # (tt,H)

    @pl.when(j == pl.num_programs(1) - 1)
    def _():
        out_ref[...] = (acc_ref[...] * w_ref[...]).astype(out_ref.dtype)  # bf16 out


def grouped_expert_ffn(tile_expert, tile_valid, x_rows, w_rows, w1, w2, w3,
                       *, tt, tf, vmem_limit):
    rows, hidden = x_rows.shape
    ffn = w1.shape[2]
    n_tiles = rows // tt
    grid = (n_tiles, ffn // tf)
    cost = pl.CostEstimate(
        flops=int(6 * rows * hidden * ffn),
        transcendentals=int(rows * ffn),
        bytes_accessed=int(n_tiles * 3 * hidden * ffn * 2    # weight stream / tile
                           + rows * hidden * 2               # x in (bf16)
                           + rows * hidden * 2               # out (bf16)
                           + rows * 4))                      # row weights
    return pl.pallas_call(
        _grouped_ffn_kernel,
        out_shape=jax.ShapeDtypeStruct((rows, hidden), jnp.bfloat16),
        grid_spec=pltpu.PrefetchScalarGridSpec(
            num_scalar_prefetch=2,                 # tile->expert, tile->valid (SMEM)
            grid=grid,
            in_specs=[
                pl.BlockSpec((tt, hidden), lambda i, j, te, tv: (i, 0)),      # tokens
                pl.BlockSpec((tt, 1), lambda i, j, te, tv: (i, 0)),           # row weights
                pl.BlockSpec((None, hidden, tf), lambda i, j, te, tv: (te[i], 0, j)),  # W1
                pl.BlockSpec((None, hidden, tf), lambda i, j, te, tv: (te[i], 0, j)),  # W2
                pl.BlockSpec((None, tf, hidden), lambda i, j, te, tv: (te[i], j, 0)),  # W3
            ],
            out_specs=pl.BlockSpec((tt, hidden), lambda i, j, te, tv: (i, 0)),
            scratch_shapes=[pltpu.VMEM((tt, hidden), jnp.float32)]),
        compiler_params=pltpu.CompilerParams(
            dimension_semantics=("parallel", "arbitrary"),
            vmem_limit_bytes=vmem_limit),
        cost_estimate=cost,
    )(tile_expert, tile_valid, x_rows, w_rows, w1, w2, w3)


# ---------------------------------------------------------------------------
# MoE forward (mirrors MoE.forward: returns (output, l_aux, exp_counts))
# ---------------------------------------------------------------------------
def moe_forward(hidden_states, params, used_token=None, use_residual=False):
    B, S, H = hidden_states.shape
    T = B * S
    x2d = hidden_states.reshape(T, H)
    x_bf16 = x2d.astype(jnp.bfloat16)
    wg = params["wg"]
    E = wg.shape[1]

    # ---- gating kernel (Pallas): argmax idx, top-1 prob, per-tile gate sums ----
    idx, top1, gsum = gate_router(x_bf16, wg.astype(jnp.bfloat16))
    expert_idx = idx[:, 0]
    top1 = top1[:, 0]

    # ---- GShard bookkeeping (tiny (T,E) reductions; plain-JAX glue) ----
    onehot = jax.nn.one_hot(expert_idx, E, dtype=jnp.float32)
    counts = jnp.sum(onehot, axis=0).astype(jnp.int32)        # routing (pre-mask)
    mask1 = onehot
    if used_token is not None:
        mask1 = mask1 * used_token.reshape(-1, 1).astype(jnp.float32)
    exp_counts = jnp.sum(mask1, axis=0).astype(jnp.int32)
    me = jnp.sum(gsum.reshape(-1, E), axis=0) / T
    ce = jnp.mean(mask1, axis=0)
    l_aux = jnp.sum(me * ce) * E

    combine = top1 * jnp.sum(mask1, axis=-1)                  # 0 for masked tokens

    if use_residual:
        coef = jax.nn.softmax(x2d.astype(jnp.float32) @ params["wc"] + params["bc"],
                              axis=-1)                        # (T,2)
        w_expert = combine * coef[:, 0]                       # fold coef0 into expert path
        w_resid = coef[:, 1]                                  # residual path weight
    else:
        w_expert = combine

    # ---- grouped (sorted-token) routing glue ----
    F = params["w1"].shape[2]
    tt, tf, ffn_padded, vmem_limit = _select_tiles(T, H, F)

    tiles_per_e = (counts + tt - 1) // tt
    row_start_e = _excl_cumsum(tiles_per_e) * tt              # padded row offset / expert
    group_start = _excl_cumsum(counts)                        # offset in sorted order

    order = jnp.argsort(expert_idx)                           # tokens sorted by expert
    sorted_exp = expert_idx[order]
    rank = jnp.arange(T, dtype=jnp.int32) - group_start[sorted_exp]
    dest = row_start_e[sorted_exp] + rank                     # position in padded buffer

    n_exp_tiles = pl.cdiv(T, tt) + E                          # static upper bound
    n_res_tiles = pl.cdiv(T, tt) if use_residual else 0
    exp_rows = n_exp_tiles * tt
    total_rows = exp_rows + n_res_tiles * tt

    src = jnp.full((total_rows,), T, dtype=jnp.int32)         # sentinel -> zero row
    wrow = jnp.zeros((total_rows,), jnp.float32)
    src = src.at[dest].set(order.astype(jnp.int32))
    wrow = wrow.at[dest].set(w_expert[order])

    n_used = jnp.sum(tiles_per_e)
    boundaries = jnp.cumsum(tiles_per_e)
    tile_ids = jnp.arange(n_exp_tiles, dtype=jnp.int32)
    tile_expert = jnp.sum(
        (tile_ids[:, None] >= boundaries[None, :]).astype(jnp.int32), axis=-1)
    tile_expert = jnp.minimum(tile_expert, E - 1)             # dummy tail tiles
    tile_valid = (tile_ids < n_used).astype(jnp.int32)        # skip compute on dummies

    if use_residual:
        # residual FFN fused as expert index E over ALL tokens (original order)
        res_pos = exp_rows + jnp.arange(T, dtype=jnp.int32)
        src = src.at[res_pos].set(jnp.arange(T, dtype=jnp.int32))
        wrow = wrow.at[res_pos].set(w_resid)
        tile_expert = jnp.concatenate(
            [tile_expert, jnp.full((n_res_tiles,), E, jnp.int32)])
        tile_valid = jnp.concatenate(
            [tile_valid, jnp.ones((n_res_tiles,), jnp.int32)])

    # TODO(synk): gather token rows inside the FFN kernel via scalar-prefetched
    # `src` (pl.ANY + manual DMA) so x_rows is never materialized in HBM.
    x_pad = jnp.concatenate([x_bf16, jnp.zeros((1, H), jnp.bfloat16)], axis=0)
    x_rows = x_pad[src]                                       # (total_rows, H) bf16
    w_rows = wrow[:, None]                                    # (total_rows, 1) f32

    # zero-pad odd FFN dims up to a multiple of the F chunk (never untiled-F)
    w1, w2, w3 = params["w1"], params["w2"], params["w3"]
    if ffn_padded != F:
        pad = ffn_padded - F
        w1 = jnp.pad(w1, ((0, 0), (0, 0), (0, pad)))
        w2 = jnp.pad(w2, ((0, 0), (0, 0), (0, pad)))
        w3 = jnp.pad(w3, ((0, 0), (0, pad), (0, 0)))

    # ---- expert + residual FFNs in one grouped Pallas call (bf16 out) ----
    y = grouped_expert_ffn(tile_expert.astype(jnp.int32), tile_valid.astype(jnp.int32),
                           x_rows, w_rows, w1, w2, w3,
                           tt=tt, tf=tf, vmem_limit=vmem_limit)

    # ---- un-permute back to token order (bf16) + fused residual add ----
    pos_expert = jnp.zeros((T,), jnp.int32).at[order].set(dest)
    out = y[pos_expert]
    if use_residual:
        out = out + y[exp_rows:exp_rows + T]                  # contiguous slice + add

    return out.astype(hidden_states.dtype).reshape(B, S, H), l_aux, exp_counts


# ---------------------------------------------------------------------------
# Deterministic parameter init (shapes implied by the module's __init__).
# Expert weights are stored bf16 (MXU-native); residual FFN stacked as expert E.
# TODO(synk): int8 (v5e/v6e) or fp8 (v7x) weight quantization would halve the
# weight-streaming bytes that bound this kernel; kept bf16 for parity.
# ---------------------------------------------------------------------------
def init_params(key, hidden_size, ffn_size, num_experts, use_residual):
    ks = jax.random.split(key, 9)
    s = 0.02
    e_tot = num_experts + (1 if use_residual else 0)
    p = dict(
        wg=s * jax.random.normal(ks[0], (hidden_size, num_experts), jnp.float32),
        w1=(s * jax.random.normal(ks[1], (e_tot, hidden_size, ffn_size),
                                  jnp.float32)).astype(jnp.bfloat16),
        w2=(s * jax.random.normal(ks[2], (e_tot, hidden_size, ffn_size),
                                  jnp.float32)).astype(jnp.bfloat16),
        w3=(s * jax.random.normal(ks[3], (e_tot, ffn_size, hidden_size),
                                  jnp.float32)).astype(jnp.bfloat16),
    )
    if use_residual:
        p.update(
            wc=s * jax.random.normal(ks[7], (hidden_size, 2), jnp.float32),
            bc=jnp.zeros((2,), jnp.float32),
        )
    return p


if __name__ == "__main__":
    B, S, H = 2, 8, 32          # batch, seq, hidden
    mlp_ratio = 2
    F = int(H * mlp_ratio)      # expert FFN hidden dim
    E = 4                       # num_experts
    use_residual = True         # exercise the residual-MoE branch too

    key = jax.random.PRNGKey(0)
    k_x, k_p = jax.random.split(key)
    hidden_states = jax.random.normal(k_x, (B, S, H), jnp.float32)
    params = init_params(k_p, H, F, E, use_residual)

    moe_fwd = jax.jit(functools.partial(moe_forward, used_token=None,
                                        use_residual=use_residual))
    output, l_aux, exp_counts = moe_fwd(hidden_states, params)

    jax.block_until_ready((output, l_aux, exp_counts))
    assert output.shape == (B, S, H)
    assert exp_counts.shape == (E,)
    assert bool(jnp.isfinite(output).all())
    assert bool(jnp.isfinite(l_aux))
    print("KERNEL_OK")
</pallas_src>

<mosaic_0001>
module attributes {stable_mosaic.version = 11 : i64} {
  func.func @_gate_kernel(%arg0: i32, %arg1: memref<16x32xbf16, #tpu.memory_space<vmem>>, %arg2: memref<32x4xbf16, #tpu.memory_space<vmem>>, %arg3: memref<16x1xi32, #tpu.memory_space<vmem>>, %arg4: memref<16x1xf32, #tpu.memory_space<vmem>>, %arg5: memref<1x1x4xf32, #tpu.memory_space<vmem>>) attributes {dimension_semantics = [#tpu.dimension_semantics<parallel>], iteration_bounds = array<i64: 1>, scalar_prefetch = 0 : i64, scratch_operands = 0 : i64, tpu.core_type = #tpu.core_type<tc>, window_params = [{transform_indices = @transform_0, window_bounds = array<i64: 16, 32>}, {pipeline_mode = #tpu.pipeline_mode<synchronous>, transform_indices = @transform_1, window_bounds = array<i64: 32, 4>}, {transform_indices = @transform_2, window_bounds = array<i64: 16, 1>}, {transform_indices = @transform_3, window_bounds = array<i64: 16, 1>}, {transform_indices = @transform_4, window_bounds = array<i64: 1, 1, 4>}]} {
    %c0 = arith.constant 0 : index
    %c0_0 = arith.constant 0 : index
    %0 = vector.load %arg1[%c0, %c0_0] : memref<16x32xbf16, #tpu.memory_space<vmem>>, vector<16x32xbf16>
    %c0_1 = arith.constant 0 : index
    %c0_2 = arith.constant 0 : index
    %1 = vector.load %arg2[%c0_1, %c0_2] : memref<32x4xbf16, #tpu.memory_space<vmem>>, vector<32x4xbf16>
    %cst = arith.constant dense<0.000000e+00> : vector<16x4xf32>
    %2 = tpu.matmul %0, %1, %cst {dimension_numbers = #tpu.dot_dimension_numbers<[1], [0], [0], [1], [0, 0, 1, 1], [], []>} : vector<16x32xbf16>, vector<32x4xbf16>, vector<16x4xf32> -> vector<16x4xf32>
    %cst_3 = arith.constant dense<0xFF800000> : vector<16xf32>
    %3 = vector.multi_reduction <maximumf>, %2, %cst_3 [1] : vector<16x4xf32> to vector<16xf32>
    %4 = vector.shape_cast %3 : vector<16xf32> to vector<16x1xf32>
    %5 = vector.broadcast %4 : vector<16x1xf32> to vector<16x4xf32>
    %6 = arith.subf %2, %5 : vector<16x4xf32>
    %7 = math.exp %6 : vector<16x4xf32>
    %cst_4 = arith.constant dense<0.000000e+00> : vector<16xf32>
    %8 = vector.multi_reduction <add>, %7, %cst_4 [1] : vector<16x4xf32> to vector<16xf32>
    %9 = vector.shape_cast %8 : vector<16xf32> to vector<16x1xf32>
    %cst_5 = arith.constant 1.000000e+00 : f32
    %10 = vector.broadcast %cst_5 : f32 to vector<16x1xf32>
    %11 = arith.divf %10, %9 : vector<16x1xf32>
    %12 = tpu.iota {dimensions = array<i32: 1>} : vector<16x4xi32>
    %13 = vector.broadcast %4 : vector<16x1xf32> to vector<16x4xf32>
    %14 = arith.cmpf oeq, %2, %13 : vector<16x4xf32>
    %c4_i32 = arith.constant 4 : i32
    %15 = vector.broadcast %c4_i32 : i32 to vector<16x4xi32>
    %16 = arith.select %14, %12, %15 : vector<16x4xi1>, vector<16x4xi32>
    %cst_6 = arith.constant dense<2147483647> : vector<16xi32>
    %17 = vector.multi_reduction <minsi>, %16, %cst_6 [1] : vector<16x4xi32> to vector<16xi32>
    %18 = vector.shape_cast %17 : vector<16xi32> to vector<16x1xi32>
    %c0_7 = arith.constant 0 : index
    %c0_8 = arith.constant 0 : index
    %19 = vector.load %arg3[%c0_7, %c0_8] : memref<16x1xi32, #tpu.memory_space<vmem>>, vector<16x1xi32>
    tpu.vector_store %arg3[%c0_7, %c0_8], %18 {strides = array<i32>} : memref<16x1xi32, #tpu.memory_space<vmem>>, vector<16x1xi32>,
    %c0_9 = arith.constant 0 : index
    %c0_10 = arith.constant 0 : index
    %20 = vector.load %arg4[%c0_9, %c0_10] : memref<16x1xf32, #tpu.memory_space<vmem>>, vector<16x1xf32>
    tpu.vector_store %arg4[%c0_9, %c0_10], %11 {strides = array<i32>} : memref<16x1xf32, #tpu.memory_space<vmem>>, vector<16x1xf32>,
    %21 = tpu.iota {dimensions = array<i32: 0>} : vector<16x1xi32>
    %c16_i32 = arith.constant 16 : i32
    %22 = arith.muli %arg0, %c16_i32 : i32
    %23 = vector.broadcast %22 : i32 to vector<16x1xi32>
    %24 = arith.addi %21, %23 : vector<16x1xi32>
    %c16_i32_11 = arith.constant 16 : i32
    %25 = vector.broadcast %c16_i32_11 : i32 to vector<16x1xi32>
    %26 = arith.cmpi slt, %24, %25 : vector<16x1xi32>
    %27 = vector.broadcast %11 : vector<16x1xf32> to vector<16x4xf32>
    %28 = arith.mulf %7, %27 : vector<16x4xf32>
    %cst_12 = arith.constant 0.000000e+00 : f32
    %29 = vector.shape_cast %26 : vector<16x1xi1> to vector<16x1xi1>
    %30 = vector.broadcast %29 : vector<16x1xi1> to vector<16x4xi1>
    %31 = vector.broadcast %cst_12 : f32 to vector<16x4xf32>
    %32 = arith.select %30, %28, %31 : vector<16x4xi1>, vector<16x4xf32>
    %cst_13 = arith.constant dense<0.000000e+00> : vector<4xf32>
    %33 = vector.multi_reduction <add>, %32, %cst_13 [0] : vector<16x4xf32> to vector<4xf32>
    %34 = vector.shape_cast %33 : vector<4xf32> to vector<1x4xf32>
    %35 = vector.shape_cast %34 : vector<1x4xf32> to vector<1x1x4xf32>
    %c0_14 = arith.constant 0 : index
    %c0_15 = arith.constant 0 : index
    %c0_16 = arith.constant 0 : index
    %36 = vector.load %arg5[%c0_14, %c0_15, %c0_16] : memref<1x1x4xf32, #tpu.memory_space<vmem>>, vector<1x1x4xf32>
    tpu.vector_store %arg5[%c0_14, %c0_15, %c0_16], %35 {strides = array<i32>} : memref<1x1x4xf32, #tpu.memory_space<vmem>>, vector<1x1x4xf32>,
    return
  }
  func.func @transform_0(%arg0: i32) -> (i32, i32) {
    %c0_i32 = arith.constant 0 : i32
    %c0_i32_0 = arith.constant 0 : i32
    return %arg0, %c0_i32 : i32, i32
  }
  func.func @transform_1(%arg0: i32) -> (i32, i32) {
    %c0_i32 = arith.constant 0 : i32
    %c0_i32_0 = arith.constant 0 : i32
    %c0_i32_1 = arith.constant 0 : i32
    return %c0_i32, %c0_i32_0 : i32, i32
  }
  func.func @transform_2(%arg0: i32) -> (i32, i32) {
    %c0_i32 = arith.constant 0 : i32
    %c0_i32_0 = arith.constant 0 : i32
    return %arg0, %c0_i32 : i32, i32
  }
  func.func @transform_3(%arg0: i32) -> (i32, i32) {
    %c0_i32 = arith.constant 0 : i32
    %c0_i32_0 = arith.constant 0 : i32
    return %arg0, %c0_i32 : i32, i32
  }
  func.func @transform_4(%arg0: i32) -> (i32, i32, i32) {
    %c0_i32 = arith.constant 0 : i32
    %c0_i32_0 = arith.constant 0 : i32
    %c0_i32_1 = arith.constant 0 : i32
    return %arg0, %c0_i32, %c0_i32_0 : i32, i32, i32
  }
}

module attributes {stable_mosaic.version = 11 : i64} {
  func.func @_grouped_ffn_kernel(%arg0: i32, %arg1: i32, %arg2: memref<6xi32, #tpu.memory_space<smem>>, %arg3: memref<6xi32, #tpu.memory_space<smem>>, %arg4: memref<16x32xbf16, #tpu.memory_space<vmem>>, %arg5: memref<16x1xf32, #tpu.memory_space<vmem>>, %arg6: memref<1x32x64xbf16, #tpu.memory_space<vmem>>, %arg7: memref<1x32x64xbf16, #tpu.memory_space<vmem>>, %arg8: memref<1x64x32xbf16, #tpu.memory_space<vmem>>, %arg9: memref<16x32xbf16, #tpu.memory_space<vmem>>, %arg10: memref<16x32xf32, #tpu.memory_space<vmem>>) attributes {dimension_semantics = [#tpu.dimension_semantics<parallel>, #tpu.dimension_semantics<arbitrary>], iteration_bounds = array<i64: 6, 1>, scalar_prefetch = 2 : i64, scratch_operands = 1 : i64, tpu.core_type = #tpu.core_type<tc>, window_params = [{transform_indices = @transform_0, window_bounds = array<i64: 16, 32>}, {transform_indices = @transform_1, window_bounds = array<i64: 16, 1>}, {transform_indices = @transform_2, window_bounds = array<i64: 1, 32, 64>}, {transform_indices = @transform_3, window_bounds = array<i64: 1, 32, 64>}, {transform_indices = @transform_4, window_bounds = array<i64: 1, 64, 32>}, {transform_indices = @transform_5, window_bounds = array<i64: 16, 32>}]} {
    %c0_i32 = arith.constant 0 : i32
    %0 = arith.cmpi eq, %arg1, %c0_i32 : i32
    %1 = arith.extui %0 : i1 to i32
    %c0_i32_0 = arith.constant 0 : i32
    %2 = arith.cmpi ne, %1, %c0_i32_0 : i32
    scf.if %2 {
      %cst = arith.constant 0.000000e+00 : f32
      %11 = vector.broadcast %cst : f32 to vector<16x32xf32>
      %c0 = arith.constant 0 : index
      %c0_5 = arith.constant 0 : index
      %12 = vector.load %arg10[%c0, %c0_5] : memref<16x32xf32, #tpu.memory_space<vmem>>, vector<16x32xf32>
      tpu.vector_store %arg10[%c0, %c0_5], %11 {strides = array<i32>} : memref<16x32xf32, #tpu.memory_space<vmem>>, vector<16x32xf32>,
    } else {
    }
    %3 = arith.index_cast %arg0 : i32 to index
    %4 = memref.load %arg3[%3] : memref<6xi32, #tpu.memory_space<smem>>
    %c0_i32_1 = arith.constant 0 : i32
    %5 = arith.cmpi sgt, %4, %c0_i32_1 : i32
    %6 = arith.extui %5 : i1 to i32
    %c0_i32_2 = arith.constant 0 : i32
    %7 = arith.cmpi ne, %6, %c0_i32_2 : i32
    scf.if %7 {
      %c0 = arith.constant 0 : index
      %c0_5 = arith.constant 0 : index
      %11 = vector.load %arg4[%c0, %c0_5] : memref<16x32xbf16, #tpu.memory_space<vmem>>, vector<16x32xbf16>
      %c0_6 = arith.constant 0 : index
      %c0_7 = arith.constant 0 : index
      %c0_8 = arith.constant 0 : index
      %12 = vector.load %arg6[%c0_6, %c0_7, %c0_8] : memref<1x32x64xbf16, #tpu.memory_space<vmem>>, vector<1x32x64xbf16>
      %13 = vector.shape_cast %12 : vector<1x32x64xbf16> to vector<32x64xbf16>
      %cst = arith.constant dense<0.000000e+00> : vector<16x64xf32>
      %14 = tpu.matmul %11, %13, %cst {dimension_numbers = #tpu.dot_dimension_numbers<[1], [0], [0], [1], [0, 0, 1, 1], [], []>} : vector<16x32xbf16>, vector<32x64xbf16>, vector<16x64xf32> -> vector<16x64xf32>
      %c0_9 = arith.constant 0 : index
      %c0_10 = arith.constant 0 : index
      %c0_11 = arith.constant 0 : index
      %15 = vector.load %arg7[%c0_9, %c0_10, %c0_11] : memref<1x32x64xbf16, #tpu.memory_space<vmem>>, vector<1x32x64xbf16>
      %16 = vector.shape_cast %15 : vector<1x32x64xbf16> to vector<32x64xbf16>
      %cst_12 = arith.constant dense<0.000000e+00> : vector<16x64xf32>
      %17 = tpu.matmul %11, %16, %cst_12 {dimension_numbers = #tpu.dot_dimension_numbers<[1], [0], [0], [1], [0, 0, 1, 1], [], []>} : vector<16x32xbf16>, vector<32x64xbf16>, vector<16x64xf32> -> vector<16x64xf32>
      %18 = arith.negf %14 : vector<16x64xf32>
      %19 = math.exp %18 : vector<16x64xf32>
      %cst_13 = arith.constant 1.000000e+00 : f32
      %20 = vector.broadcast %cst_13 : f32 to vector<16x64xf32>
      %21 = arith.addf %20, %19 : vector<16x64xf32>
      %22 = arith.divf %20, %21 : vector<16x64xf32>
      %23 = arith.mulf %14, %22 : vector<16x64xf32>
      %24 = arith.mulf %23, %17 : vector<16x64xf32>
      %c0_14 = arith.constant 0 : index
      %c0_15 = arith.constant 0 : index
      %25 = vector.load %arg10[%c0_14, %c0_15] : memref<16x32xf32, #tpu.memory_space<vmem>>, vector<16x32xf32>
      %26 = arith.truncf %24 : vector<16x64xf32> to vector<16x64xbf16>
      %c0_16 = arith.constant 0 : index
      %c0_17 = arith.constant 0 : index
      %c0_18 = arith.constant 0 : index
      %27 = vector.load %arg8[%c0_16, %c0_17, %c0_18] : memref<1x64x32xbf16, #tpu.memory_space<vmem>>, vector<1x64x32xbf16>
      %28 = vector.shape_cast %27 : vector<1x64x32xbf16> to vector<64x32xbf16>
      %cst_19 = arith.constant dense<0.000000e+00> : vector<16x32xf32>
      %29 = tpu.matmul %26, %28, %cst_19 {dimension_numbers = #tpu.dot_dimension_numbers<[1], [0], [0], [1], [0, 0, 1, 1], [], []>} : vector<16x64xbf16>, vector<64x32xbf16>, vector<16x32xf32> -> vector<16x32xf32>
      %30 = arith.addf %25, %29 : vector<16x32xf32>
      %c0_20 = arith.constant 0 : index
      %c0_21 = arith.constant 0 : index
      %31 = vector.load %arg10[%c0_20, %c0_21] : memref<16x32xf32, #tpu.memory_space<vmem>>, vector<16x32xf32>
      tpu.vector_store %arg10[%c0_20, %c0_21], %30 {strides = array<i32>} : memref<16x32xf32, #tpu.memory_space<vmem>>, vector<16x32xf32>,
    } else {
    }
    %c0_i32_3 = arith.constant 0 : i32
    %8 = arith.cmpi eq, %arg1, %c0_i32_3 : i32
    %9 = arith.extui %8 : i1 to i32
    %c0_i32_4 = arith.constant 0 : i32
    %10 = arith.cmpi ne, %9, %c0_i32_4 : i32
    scf.if %10 {
      %c0 = arith.constant 0 : index
      %c0_5 = arith.constant 0 : index
      %11 = vector.load %arg10[%c0, %c0_5] : memref<16x32xf32, #tpu.memory_space<vmem>>, vector<16x32xf32>
      %c0_6 = arith.constant 0 : index
      %c0_7 = arith.constant 0 : index
      %12 = vector.load %arg5[%c0_6, %c0_7] : memref<16x1xf32, #tpu.memory_space<vmem>>, vector<16x1xf32>
      %13 = vector.broadcast %12 : vector<16x1xf32> to vector<16x32xf32>
      %14 = arith.mulf %11, %13 : vector<16x32xf32>
      %15 = arith.truncf %14 : vector<16x32xf32> to vector<16x32xbf16>
      %c0_8 = arith.constant 0 : index
      %c0_9 = arith.constant 0 : index
      %16 = vector.load %arg9[%c0_8, %c0_9] : memref<16x32xbf16, #tpu.memory_space<vmem>>, vector<16x32xbf16>
      tpu.vector_store %arg9[%c0_8, %c0_9], %15 {strides = array<i32>} : memref<16x32xbf16, #tpu.memory_space<vmem>>, vector<16x32xbf16>,
    } else {
    }
    return
  }
  func.func @transform_0(%arg0: i32, %arg1: i32, %arg2: memref<6xi32, #tpu.memory_space<smem>>, %arg3: memref<6xi32, #tpu.memory_space<smem>>) -> (i32, i32) {
    %c0_i32 = arith.constant 0 : i32
    %c0_i32_0 = arith.constant 0 : i32
    return %arg0, %c0_i32 : i32, i32
  }
  func.func @transform_1(%arg0: i32, %arg1: i32, %arg2: memref<6xi32, #tpu.memory_space<smem>>, %arg3: memref<6xi32, #tpu.memory_space<smem>>) -> (i32, i32) {
    %c0_i32 = arith.constant 0 : i32
    %c0_i32_0 = arith.constant 0 : i32
    return %arg0, %c0_i32 : i32, i32
  }
  func.func @transform_2(%arg0: i32, %arg1: i32, %arg2: memref<6xi32, #tpu.memory_space<smem>>, %arg3: memref<6xi32, #tpu.memory_space<smem>>) -> (i32, i32, i32) {
    %0 = arith.index_cast %arg0 : i32 to index
    %1 = memref.load %arg2[%0] : memref<6xi32, #tpu.memory_space<smem>>
    %c0_i32 = arith.constant 0 : i32
    %c0_i32_0 = arith.constant 0 : i32
    return %1, %c0_i32, %arg1 : i32, i32, i32
  }
  func.func @transform_3(%arg0: i32, %arg1: i32, %arg2: memref<6xi32, #tpu.memory_space<smem>>, %arg3: memref<6xi32, #tpu.memory_space<smem>>) -> (i32, i32, i32) {
    %0 = arith.index_cast %arg0 : i32 to index
    %1 = memref.load %arg2[%0] : memref<6xi32, #tpu.memory_space<smem>>
    %c0_i32 = arith.constant 0 : i32
    %c0_i32_0 = arith.constant 0 : i32
    return %1, %c0_i32, %arg1 : i32, i32, i32
  }
  func.func @transform_4(%arg0: i32, %arg1: i32, %arg2: memref<6xi32, #tpu.memory_space<smem>>, %arg3: memref<6xi32, #tpu.memory_space<smem>>) -> (i32, i32, i32) {
    %0 = arith.index_cast %arg0 : i32 to index
    %1 = memref.load %arg2[%0] : memref<6xi32, #tpu.memory_space<smem>>
    %c0_i32 = arith.constant 0 : i32
    %c0_i32_0 = arith.constant 0 : i32
    return %1, %arg1, %c0_i32 : i32, i32, i32
  }
  func.func @transform_5(%arg0: i32, %arg1: i32, %arg2: memref<6xi32, #tpu.memory_space<smem>>, %arg3: memref<6xi32, #tpu.memory_space<smem>>) -> (i32, i32) {
    %c0_i32 = arith.constant 0 : i32
    %c0_i32_0 = arith.constant 0 : i32
    return %arg0, %c0_i32 : i32, i32
  }
}

</mosaic_0001>

<bundles_post_ra>
// kernel: moe_forward.2
= control target key start
LH: loop header
LB: loop body
LE: loop exit
PB: predicated region body
PF: predicated region fallthrough
CT: control target
= control target key end

     0   :  { %v215_v0 = vmov 0.0   ;;  %vm216_vm0 = vmmov 0   ;;  %vm38_vm1 = vcmask 261120   ;;  %vm83_vm2 = vcmask 31744   ;;  %s278_s1 = inlined_call_operand.vmem [shape: bf16[32,4], index: 1, kind: input, shape index: {}]   ;;  %s279_s0 = inlined_call_operand.vmem [shape: bf16[16,32], index: 0, kind: input, shape index: {}]   ;;  %s280_s3 = inlined_call_operand.vmem [shape: f32[16,1], index: 3, kind: output, shape index: {1}]   ;;  %s281_s4 = inlined_call_operand.vmem [shape: f32[1,1,4], index: 4, kind: output, shape index: {2}]   ;;  %s282_s2 = inlined_call_operand.vmem [shape: s32[16,1], index: 2, kind: output, shape index: {0}]  }
   0x1   :  { %194 = vmatprep.subr.bf16.mxu0 %v215_v0  ;;  %v204_v1 = vld [vmem:[%s278_s1] sm:$0xff]   ;;  %198 = vmatprep.mubr.msk.bf16.mxu0 %vm216_vm0, %v215_v0  ;;  %v205_v2 = vld [vmem:[%s278_s1 + $0x8] sm:$0xff]   ;;  %v106_v10 = vlaneseq  ;;  %vm142_vm7 = vcmask 7168   ;;  %vm173_vm8 = vcmask 24576  }
   0x2   :  { %195 = vmatpush3.bf16.msra.mxu0 %v204_v1  ;;  %v206_v3 = vld [vmem:[%s279_s0] sm:$0xff]  }
   0x3   :  { %196 = vmatprep.subr.bf16.mxu0 %v215_v0  ;;  %v107_v11 = vand.u32 127, %v106_v10 }
   0x6   :  { %197 = vmatpush3.bf16.msra.mxu0 %v205_v2 }
   0x9   :  { %199 = vmatmul.mubr.msk.bf16.vlgmr.msra.gmra.mrb[0].mxu0 %vm38_vm1, %v206_v3 }
  0xdc   :  { %v76_v4 = vpop.f32.mrb[0].mxu0 }
  0xdd   :  { %v200_v5 = vpop.f32.mrb[1].mxu0  ;;  %v84_v6 = vsel %vm83_vm2, %v76_v4, -inf }
  0xde   :  { %85 = vmax.xlane.f32.xlu0 %v84_v6  ;;  %v79_v7 = vpop.f32.mrb[2].mxu0 }
  0xdf   :  { %v201_v8 = vpop.f32.mrb[3].mxu0  ;;  %v87_v9 = vsel %vm83_vm2, %v79_v7, -inf }
  0xe2   :  { %88 = vmax.xlane.f32.xlu0 %v87_v9 }
 0x16b   :  { %v86_v12 = vpop.xlane.xlu0 %85 }
 0x16c   :  { %v90_v13 = vsub.f32 %v76_v4, %v86_v12  ;;  %vm108_vm3 = vcmp.eq.f32.partialorder %v76_v4, %v86_v12 }
 0x16d   :  { %v110_v14 = vsel %vm108_vm3, %v107_v11, 4 }
 0x16e   :  { %v92_v15 = vmul.f32 1.442695, %v90_v13  ;;  %v112_v16 = vsel %vm83_vm2, %v110_v14, 2147483647 }
 0x16f   :  { %v89_v17 = vpop.xlane.xlu0 %88  ;;  %v114_v18 = vshra.s32 %v112_v16, 16  ;;  %v113_v30 = vand.u32 65535, %v112_v16 }
 0x170   :  { %207 = vpow2.f32 %v92_v15  ;;  %v91_v19 = vsub.f32 %v79_v7, %v89_v17  ;;  %vm109_vm4 = vcmp.eq.f32.partialorder %v79_v7, %v89_v17 }
 0x171   :  { %v111_v20 = vsel %vm109_vm4, %v107_v11, 4  ;;  %v116_v21 = vcvt.s32.f32 %v114_v18  ;;  %v115_v32 = vcvt.s32.f32 %v113_v30 }
 0x172   :  { %v94_v22 = vmul.f32 1.442695, %v91_v19  ;;  %v127_v23 = vsel %vm83_vm2, %v111_v20, 2147483647 }
 0x173   :  { %117 = vmin.xlane.f32.xlu1 %v116_v21  ;;  %v129_v24 = vshra.s32 %v127_v23, 16  ;;  %v128_v33 = vand.u32 65535, %v127_v23 }
 0x174   :  { %209 = vpow2.f32 %v94_v22 }
 0x175   :  { %v131_v25 = vcvt.s32.f32 %v129_v24  ;;  %v130_v36 = vcvt.s32.f32 %v128_v33 }
 0x177   :  { %132 = vmin.xlane.f32.xlu1 %v131_v25 }
 0x17a   :  { %v208_v26 = vpop.eup %207 }
 0x17b   :  { %v96_v27 = vsel %vm83_vm2, %v208_v26, 0.0 }
 0x17c   :  { %97 = vadd.xlane.f32.xlu0 %v96_v27 }
 0x17e   :  { %v210_v28 = vpop.eup %209 }
 0x17f   :  { %v99_v29 = vsel %vm83_vm2, %v210_v28, 0.0 }
 0x180   :  { %100 = vadd.xlane.f32.xlu1 %v99_v29 }
 0x200   :  { %v118_v31 = vpop.xlane.xlu1 %117 }
 0x201   :  { %vm119_vm5 = vcmp.eq.f32.partialorder %v116_v21, %v118_v31  ;;  %v124_v53 = vcvt.f32.s32 %v118_v31 }
 0x202   :  { %v120_v34 = vsel %vm119_vm5, %v115_v32, inf }
 0x203   :  { %121 = vmin.xlane.f32.xlu0 %v120_v34  ;;  %v125_v55 = vshll.u32 %v124_v53, 16 }
 0x204   :  { %v133_v35 = vpop.xlane.xlu1 %132 }
 0x205   :  { %vm134_vm6 = vcmp.eq.f32.partialorder %v131_v25, %v133_v35  ;;  %v139_v56 = vcvt.f32.s32 %v133_v35 }
 0x206   :  { %v135_v37 = vsel %vm134_vm6, %v130_v36, inf }
 0x207   :  { %136 = vmin.xlane.f32.xlu1 %v135_v37  ;;  %v140_v60 = vshll.u32 %v139_v56, 16 }
 0x209   :  { %v98_v38 = vpop.xlane.xlu0 %97 }
 0x20a   :  { %211 = vrcp.f32 %v98_v38 }
 0x20d   :  { %v101_v39 = vpop.xlane.xlu1 %100 }
 0x20e   :  { %213 = vrcp.f32 %v101_v39 }
 0x214   :  { %v212_v40 = vpop.eup %211 }
 0x215   :  { %145 = vst.msk [vmem:[%s280_s3] sm:$0xff] %vm142_vm7, %v212_v40  ;;  %v156_v41 = vmul.f32 %v212_v40, %v208_v26 }
 0x217   :  { %v164_v44 = vsel %vm83_vm2, %v156_v41, 0.0 }
 0x218   :  { %v214_v42 = vpop.eup %213 }
 0x219   :  { %v157_v43 = vmul.f32 %v214_v42, %v210_v28  ;;  %146 = vst.msk [vmem:[%s280_s3 + $0x8] sm:$0xff] %vm142_vm7, %v214_v42 }
 0x21b   :  { %v165_v45 = vsel %vm83_vm2, %v157_v43, 0.0 }
 0x21c   :  { %v166_v46 = vadd.f32 %v165_v45, %v164_v44 }
 0x21e   :  { %v167_v47 = vrot.slane %v166_v46, 4 }
 0x220   :  { %v168_v48 = vadd.f32 %v167_v47, %v166_v46 }
 0x222   :  { %v169_v49 = vrot.slane %v168_v48, 2 }
 0x224   :  { %v170_v50 = vadd.f32 %v169_v49, %v168_v48 }
 0x226   :  { %v171_v51 = vrot.slane %v170_v50, 1 }
 0x228   :  { %v172_v52 = vadd.f32 %v171_v51, %v170_v50 }
 0x22a   :  { %174 = vst.msk [vmem:[%s281_s4] sm:$0x1] %vm173_vm8, %v172_v52 }
 0x290   :  { %v122_v54 = vpop.xlane.xlu0 %121 }
 0x291   :  { %v123_v57 = vcvt.f32.s32 %v122_v54 }
 0x293   :  { %v126_v58 = vadd.s32 %v125_v55, %v123_v57 }
 0x294   :  { %v137_v59 = vpop.xlane.xlu1 %136 }
 0x295   :  { %143 = vst.msk [vmem:[%s282_s2] sm:$0xff] %vm142_vm7, %v126_v58  ;;  %v138_v61 = vcvt.f32.s32 %v137_v59 }
 0x297   :  { %v141_v62 = vadd.s32 %v140_v60, %v138_v61 }
 0x299   :  { %144 = vst.msk [vmem:[%s282_s2 + $0x8] sm:$0xff] %vm142_vm7, %v141_v62 }

// kernel: moe_forward.3
= control target key start
LH: loop header
LB: loop body
LE: loop exit
PB: predicated region body
PF: predicated region fallthrough
CT: control target
= control target key end

     0   :  { %s1087_s0 = inlined_call_operand.vmem [shape: s32[6], index: 0, kind: input, shape index: {}]   ;;  %s1088_s2 = inlined_call_operand.vmem [shape: bf16[96,32], index: 2, kind: input, shape index: {}]   ;;  %s1089_s3 = inlined_call_operand.vmem [shape: f32[96,1], index: 3, kind: input, shape index: {}]   ;;  %s1090_s4 = inlined_call_operand.vmem [shape: bf16[5,32,64], index: 4, kind: input, shape index: {}]   ;;  %s1091_s5 = inlined_call_operand.vmem [shape: bf16[5,32,64], index: 5, kind: input, shape index: {}]   ;;  %s1092_s6 = inlined_call_operand.vmem [shape: bf16[5,64,32], index: 6, kind: input, shape index: {}]   ;;  %s1093_s7 = inlined_call_operand.vmem [shape: bf16[96,32], index: 7, kind: output, shape index: {}]   ;;  %s1094_s1 = inlined_call_operand.vmem [shape: s32[6], index: 1, kind: input, shape index: {}]  }
   0x1   :  { %s12_s26 = sshll.u32 %s1087_s0, 4  ;;  %s16_s29 = sshll.u32 %s1094_s1, 4  ;;  %s13_s26 = int_to_ptr.vmem [resolvable:$true] %s12_s26  ;;  %s17_s29 = int_to_ptr.vmem [resolvable:$true] %s16_s29 }
   0x2   :  { %s920_s30 = scalar_lea.vmem %s13_s26, 16  ;;  %p925_p1 = scmp.lt.s32.totalorder %s13_s26, %s13_s26 }
   0x3   :  { %p921_p0 = scmp.ne.s32.totalorder %s13_s26, %s920_s30  ;;  %p926_p2 = scmp.lt.s32.totalorder %s920_s30, %s920_s30 }
   0x5   :  { %p927_p3 = por %p926_p2, %p925_p1 }
   0x7   :  { %p928_p4 = pnand %p927_p3, %p921_p0 }
   0x9   :  { %931 = shalt.err (!%p928_p4)  }
   0xa   :  { %s970_s8 = smov [#allocation4]   ;;  %s932_s9 = scalar_lea.vmem %s17_s29, 16 }
   0xb   :  { %15 = dma.vmem_to_smem %s13_s26, 16, %s970_s8, [#allocation3] }
   0xc   :  { %p933_p5 = scmp.ne.s32.totalorder %s17_s29, %s932_s9  ;;  %p937_p6 = scmp.lt.s32.totalorder %s17_s29, %s17_s29 }
   0xd   :  { %p938_p7 = scmp.lt.s32.totalorder %s932_s9, %s932_s9 }
   0xf   :  { %p939_p8 = por %p938_p7, %p937_p6 }
  0x11   :  { %p940_p9 = pnand %p939_p8, %p933_p5 }
  0x13   :  { %943 = shalt.err (!%p940_p9)  }
  0x14   :  { %s971_s0 = smov [#allocation5]  }
  0x15   :  { %19 = dma.vmem_to_smem %s17_s29, 16, %s971_s0, [#allocation3] }
  0x16   :  { %956 = dma.done.wait [#allocation3], 32 }
  0x17   :  { %957 = vsyncadd [#allocation3], 4294967264 }
  0x18   :  { %21 = sfence }
  0x19   :  { %s1022_s1 = smov 0   ;;  %s1024_s10 = smov 0  }
  0x1a   :  { %s1026_s11 = smov 0  }
  0x1b LB: > { %s39_s12 = sadd.s32 1, %s964_s10  ;;  %p796_p10 = scmp.ge.s32.totalorder %s968_s11, 1  ;;  %s968_s11 = sphi %s1026_s11, %s27_s11   ;;  %s964_s10 = sphi %s1024_s10, %s1096_s10   ;;  %s960_s1 = sphi %s1022_s1, %s1095_s1  }
  0x1c   : > { %p41_p11 = scmp.ge.s32.totalorder %s39_s12, 6  ;;  %p282_p12 = scmp.lt.s32.totalorder %s968_s11, 7 }
  0x1e   : > { %s1098_s12 = smov (%p41_p11, %s39_s12), 0  ;;  %p283_p13 = pnand %p796_p10, %p282_p12 }
  0x1f   : > { %s797_s13 = sshll.u32 (!%p283_p13), %s960_s1, 1  ;;  %s355_s14 = sld [smem:[#allocation4 + %s960_s1]] (!%p283_p13)  ;;  %vm398_vm0 = vcmask (!%p283_p13), 261120   ;;  %v972_v0 = vmov (!%p283_p13), 0.0  }
  0x20   : > { %286 = sbr.rel (%p283_p13) target bundleno = 658 (0x292), region = 40  ;;  %p344_p0 = scmp.lt.s32.totalorder (!%p283_p13), %s797_s13, 11  ;;  %399 = vst.msk [vmem:[#allocation2] sm:$0xff] (!%p283_p13), %vm398_vm0, %v972_v0  ;;  %400 = vst.msk [vmem:[#allocation2 + $0x8] sm:$0xff] (!%p283_p13), %vm398_vm0, %v972_v0 }
  0x21   : > { %s365_s15 = sld [smem:[#allocation4 + %s960_s1]] (!%p283_p13) }
  0x22   : > { %s375_s16 = sld [smem:[#allocation4 + %s960_s1]] (!%p283_p13) }
  0x23   : > { %s401_s17 = sld [smem:[#allocation5 + %s960_s1]] (!%p283_p13) }
  0x25   : > { %p356_p1 = scmp.lt.s32.totalorder (!%p283_p13), %s355_s14, 4 }
  0x27   : > { %s1100_s13 = smov (!%p344_p0, %s797_s13), 11  ;;  %p366_p2 = scmp.lt.s32.totalorder %s365_s15, 4 }
  0x28   : > { %s798_s18 = sshll.u32 %s1100_s13, 2  ;;  %s800_s19 = sshll.u32 %s1100_s13, 3 }
  0x29   : > { %s347_s22 = scalar_lea.vmem %s1088_s2, %s798_s18  ;;  %s1048_s25 = scalar_lea.vmem %s1089_s3, %s800_s19 }
  0x2a   : > { %p377_p3 = scmp.lt.s32.totalorder %s375_s16, 4  ;;  %s1053_s28 = scalar_lea.vmem %s1093_s7, %s798_s18 }
  0x2b   : > { %s1102_s14 = smov (!%p356_p1, %s355_s14), 4  ;;  %s1104_s15 = smov (!%p366_p2, %s365_s15), 4 }
  0x2c   : > { %s828_s29 = sshll.u32 %s1102_s14, 4  ;;  %s829_s0 = sshll.u32 %s1104_s15, 4 }
  0x2d   : > { %s363_s9 = scalar_lea.vmem %s1090_s4, %s828_s29  ;;  %s373_s19 = scalar_lea.vmem %s1091_s5, %s829_s0 }
  0x2e   : > { %s1106_s16 = smov (!%p377_p3, %s375_s16), 4  ;;  %p809_p4 = scmp.le.s32.totalorder %s401_s17, 0 }
  0x2f   : > { %s830_s20 = sshll.u32 %s1106_s16, 5  ;;  %v902_v1 = vld [vmem:[%s363_s9] sm:$0xff] (!%p809_p4)   ;;  %v973_v2 = vmov (!%p809_p4), 0.0   ;;  %v903_v3 = vld [vmem:[%s363_s9 + $0x8] sm:$0xff] (!%p809_p4)   ;;  %vm974_vm1 = vmmov (!%p809_p4), 0   ;;  %vm582_vm2 = vcmask (!%p809_p4), 523264  }
  0x30   : > { %s1064_s24 = scalar_lea.vmem %s1092_s6, %s830_s20  ;;  %405 = sbr.rel (%p809_p4) target bundleno = 519 (0x207), region = 48  ;;  %844 = vmatprep.subr.bf16.mxu1 (!%p809_p4), %v973_v2  ;;  %860 = vmatprep.subr.bf16.mxu0 (!%p809_p4), %v973_v2  ;;  %v904_v4 = vld [vmem:[%s347_s22] sm:$0xff] (!%p809_p4)   ;;  %v906_v6 = vld [vmem:[%s373_s19 + $0x8] sm:$0xff] (!%p809_p4)  }
  0x31   : > { %845 = vmatpush3.bf16.msra.mxu1 (!%p809_p4), %v902_v1  ;;  %848 = vmatprep.mubr.msk.bf16.mxu1 (!%p809_p4), %vm974_vm1, %v973_v2  ;;  %v905_v5 = vld [vmem:[%s373_s19] sm:$0xff] (!%p809_p4)   ;;  %v908_v8 = vld [vmem:[%s1064_s24 + $0x8] sm:$0xff] (!%p809_p4)   ;;  %v909_v9 = vld [vmem:[%s1064_s24 + $0x10] sm:$0xff] (!%p809_p4)  }
  0x32   : > { %846 = vmatprep.subr.bf16.mxu1 (!%p809_p4), %v973_v2  ;;  %868 = vmatprep.mubr.msk.bf16.mxu0 (!%p809_p4), %vm974_vm1, %v973_v2  ;;  %v907_v7 = vld [vmem:[%s1064_s24] sm:$0xff] (!%p809_p4)   ;;  %v910_v10 = vld [vmem:[%s1064_s24 + $0x18] sm:$0xff] (!%p809_p4)   ;;  %v548_v34 = vld [vmem:[#allocation2 + $0x8] sm:$0xff] (!%p809_p4) }
  0x33   : > { %861 = vmatpush3.bf16.msra.mxu0 (!%p809_p4), %v907_v7  ;;  %v547_v32 = vld [vmem:[#allocation2] sm:$0xff] (!%p809_p4) }
  0x34   : > { %862 = vmatprep.subr.bf16.mxu0 (!%p809_p4), %v973_v2 }
  0x35   : > { %847 = vmatpush3.bf16.msra.mxu1 (!%p809_p4), %v903_v3 }
  0x36   : > { %852 = vmatprep.subr.bf16.mxu1 (!%p809_p4), %v973_v2 }
  0x37   : > { %863 = vmatpush3.bf16.msra.mxu0 %v908_v8 }
  0x38   : > { %849 = vmatmul.mubr.msk.bf16.vlgmr.msra.gmra.mrb[0].mxu1 %vm398_vm0, %v904_v4  ;;  %864 = vmatprep.subr.bf16.mxu0 %v973_v2 }
  0x39   : > { %853 = vmatpush3.bf16.msra.mxu1 %v905_v5  ;;  %856 = vmatprep.mubr.msk.bf16.mxu1 %vm974_vm1, %v973_v2 }
  0x3a   : > { %854 = vmatprep.subr.bf16.mxu1 %v973_v2 }
  0x3b   : > { %865 = vmatpush3.bf16.msra.mxu0 %v909_v9 }
  0x3c   : > { %866 = vmatprep.subr.bf16.mxu0 %v973_v2 }
  0x3d   : > { %855 = vmatpush3.bf16.msra.mxu1 %v906_v6 }
  0x3f   : > { %867 = vmatpush3.bf16.msra.mxu0 %v910_v10 }
  0x40   : > { %857 = vmatmul.mubr.msk.bf16.vlgmr.msra.gmra.mrb[4].mxu1 %vm398_vm0, %v904_v4 }
 0x10b   : > { %v467_v11 = vpop.f32.mrb[0].mxu1 }
 0x10c   : > { %v817_v12 = vmul.f32 -1.442695, %v467_v11  ;;  %v850_v13 = vpop.f32.mrb[1].mxu1 }
 0x10d   : > { %v470_v14 = vpop.f32.mrb[2].mxu1 }
 0x10e   : > { %911 = vpow2.f32 %v817_v12  ;;  %v818_v15 = vmul.f32 -1.442695, %v470_v14  ;;  %v851_v16 = vpop.f32.mrb[3].mxu1 }
 0x110   : > { %913 = vpow2.f32 %v818_v15 }
 0x113   : > { %v524_v17 = vpop.f32.mrb[4].mxu1 }
 0x114   : > { %v858_v18 = vpop.f32.mrb[5].mxu1 }
 0x115   : > { %v527_v19 = vpop.f32.mrb[6].mxu1 }
 0x116   : > { %v859_v20 = vpop.f32.mrb[7].mxu1 }
 0x118   : > { %v912_v21 = vpop.eup %911 }
 0x119   : > { %v537_v22 = vadd.f32 1.0, %v912_v21 }
 0x11a   : > { %v914_v23 = vpop.eup %913 }
 0x11b   : > { %915 = vrcp.f32 %v537_v22  ;;  %v538_v24 = vadd.f32 1.0, %v914_v23 }
 0x11d   : > { %917 = vrcp.f32 %v538_v24 }
 0x125   : > { %v916_v25 = vpop.eup %915 }
 0x126   : > { %v543_v26 = vmul.f32 %v916_v25, %v467_v11 }
 0x127   : > { %v918_v27 = vpop.eup %917 }
 0x128   : > { %v544_v28 = vmul.f32 %v918_v27, %v470_v14  ;;  %v545_v29 = vmul.f32 %v543_v26, %v524_v17 }
 0x12a   : > { %v546_v30 = vmul.f32 %v544_v28, %v527_v19 }
 0x12c   : > { %v549_v31 = vpack.c.bf16 %v546_v30, %v545_v29 }
 0x12e   : > { %869 = vmatmul.mubr.msk.bf16.vlgmr.msra.gmra.mrb[0].mxu0 %vm582_vm2, %v549_v31 }
 0x201   : > { %v620_v33 = vpop.f32.mrb[0].mxu0 }
 0x202   : > { %v627_v35 = vadd.f32 %v620_v33, %v547_v32  ;;  %v870_v36 = vpop.f32.mrb[1].mxu0 }
 0x203   : > { %v623_v37 = vpop.f32.mrb[2].mxu0 }
 0x204   : > { %629 = vst.msk [vmem:[#allocation2] sm:$0xff] %vm398_vm0, %v627_v35  ;;  %v628_v38 = vadd.f32 %v623_v37, %v548_v34  ;;  %v871_v39 = vpop.f32.mrb[3].mxu0 }
 0x206   : > { %630 = vst.msk [vmem:[#allocation2 + $0x8] sm:$0xff] %vm398_vm0, %v628_v38 }
 0x207 PF: > { %v636_v40 = vld [vmem:[%s1048_s25] sm:$0xff]  ;;  %v975_v41 = vmov 0   ;;  %v637_v42 = vld [vmem:[%s1048_s25 + $0x8] sm:$0xff]  ;;  %vm658_vm3 = vcmask 257024  }
 0x208   : > { %919 = vset.pattern.permute.xlu0 %v975_v41 }
 0x209   : > { %640 = vperm.xlu0 %919, %v636_v40  }
 0x20b   : > { %v634_v43 = vld [vmem:[#allocation2] sm:$0xff] }
 0x20d   : > { %645 = vperm.xlu0 %919, %v637_v42   ;;  %v635_v46 = vld [vmem:[#allocation2 + $0x8] sm:$0xff] }
 0x288   : > { %v641_v44 = vpop.permute.xlu0 %640 }
 0x289   : > { %v648_v45 = vmul.f32 %v641_v44, %v634_v43 }
 0x28b   : > { %v831_v47 = vpack.c.bf16 %v648_v45, %v648_v45 }
 0x28c   : > { %v646_v48 = vpop.permute.xlu0 %645 }
 0x28d   : > { %659 = vst.msk [vmem:[%s1053_s28] sm:$0xf] %vm658_vm3, %v831_v47  ;;  %v649_v49 = vmul.f32 %v646_v48, %v635_v46 }
 0x28f   : > { %v832_v50 = vpack.c.bf16 %v649_v49, %v649_v49 }
 0x291   : > { %660 = vst.msk [vmem:[%s1053_s28 + $0x4] sm:$0xf] %vm658_vm3, %v832_v50 }
 0x292 PF: > { %s27_s11 = sadd.s32 1, %s968_s11   ;;  %s1095_s1 = smov %s964_s10 }
 0x293   : > { %p24_p5 = scmp.ge.s32.totalorder %s27_s11, 8   ;;  %s1096_s10 = smov %s1098_s12 }
 0x295   :  { %26 = sbr.rel (!%p24_p5) target bundleno = 27 (0x1b), region = 94 }

</bundles_post_ra>
